<compile_context>
chip_gen: v5e
topology: v5e:2x2
jax: 0.10.0
libtpu: 0.0.40
codegen_flags: <defaults>
</compile_context>

<pallas_src>
from functools import partial

import jax
import jax.numpy as jnp
from jax import lax
from jax.experimental import pallas as pl
from jax.experimental.pallas import tpu as pltpu

EPS = 1e-8
_BLOCK_BUDGET_BYTES = 4 << 20   # padded, f32-equivalent per-block budget
_VMEM_LIMIT_BYTES = 48 << 20    # <= v7x's 64 MiB physical; plenty of headroom on v5e/v6e
_SMALL_TOTAL_BYTES = 512 << 10  # below this, a single grid step is fine
_SMALL_BLOCK_BYTES = 512 << 10  # below this, ask for 3-deep input buffering


def _normalize_kernel(x_ref, o_ref, *, p):
    # Block: (T_N, C, T_HW).  Reduce over C (axis=1); f32 accumulation.
    xf = x_ref[...].astype(jnp.float32)
    if p == 2:
        s = jnp.sum(xf * xf, axis=1, keepdims=True)
        # max(sqrt(s), eps) == sqrt(max(s, eps^2)) for s >= 0 -> one EUP rsqrt.
        inv = lax.rsqrt(jnp.maximum(s, jnp.float32(EPS * EPS)))
    elif p == 1:
        s = jnp.sum(jnp.abs(xf), axis=1, keepdims=True)
        inv = 1.0 / jnp.maximum(s, jnp.float32(EPS))
    else:
        a = jnp.abs(xf)
        if isinstance(p, int) and 2 < p <= 8:
            ap = a
            for _ in range(p - 1):          # static multiply chain, no exp*log
                ap = ap * a
        else:
            ap = a ** p
        s = jnp.sum(ap, axis=1, keepdims=True)
        norm = jnp.power(s, 1.0 / p)
        inv = 1.0 / jnp.maximum(norm, jnp.float32(EPS))

    # Single f32 multiply + one downcast: accurate and avoids v5e's emulated
    # bf16 VALU path for low-precision I/O.
    o_ref[...] = (xf * inv).astype(o_ref.dtype)


def _choose_tiles(n_pre, c, hw):
    """Pick (T_N, T_HW): lane-dense blocks sized to the padded VMEM budget."""
    # Price everything at f32-padded width: this upper-bounds both the wire
    # block (C sublane-padded to the dtype pack) and the f32 compute temps.
    c_pad_f32 = -(-c // 8) * 8
    bytes_per_col = c_pad_f32 * 4                       # per (batch-elem, lane)
    max_cols = max(1, _BLOCK_BUDGET_BYTES // bytes_per_col)

    # ---- lane tile ----
    if hw <= 128:
        t_hw = hw                                       # full extent (only legal block)
    else:
        hw_floor = (hw // 128) * 128                    # never exceed the array dim
        cap = max(128, (min(max_cols, hw_floor) // 128) * 128)
        t_hw = cap
        if hw % 128 == 0:
            # Prefer an exact divisor (no masked stores anywhere) unless it is
            # much smaller than the byte-budget cap.
            t = cap
            while t >= 128:
                if hw % t == 0:
                    break
                t -= 128
            if t >= 128 and 2 * t >= cap:
                t_hw = t

    # ---- fold batch elements in while the (lane-padded) block still fits ----
    lanes_pad = -(-t_hw // 128) * 128
    t_n = max(1, min(n_pre, max_cols // max(lanes_pad, 1)))
    return t_n, t_hw


def _make_in_spec(block_shape, index_map, want_deep):
    # Optional 3-deep input buffering for small blocks (exposed DMA latency
    # under 2-deep pipelining).  Fall back cleanly if unsupported.
    if want_deep and hasattr(pl, "Buffered"):
        try:
            return pl.BlockSpec(block_shape, index_map,
                                pipeline_mode=pl.Buffered(3))
        except TypeError:
            pass
    return pl.BlockSpec(block_shape, index_map)


def normalize(x, p=2, dim=1):
    """L_p-normalize over `dim`, matching F.normalize(x, p, dim, eps=1e-8)."""
    shape = x.shape
    dim = dim % x.ndim
    n_pre = 1
    for s in shape[:dim]:
        n_pre *= s
    c = shape[dim]
    n_post = 1
    for s in shape[dim + 1:]:
        n_post *= s

    itemsize = jnp.dtype(x.dtype).itemsize
    x3 = x.reshape(n_pre, c, n_post)
    t_n, t_hw = _choose_tiles(n_pre, c, n_post)

    # v7x has two TensorCores: guarantee >= 2 grid steps for non-trivial sizes.
    total_bytes = n_pre * c * n_post * itemsize
    if (pl.cdiv(n_pre, t_n) * pl.cdiv(n_post, t_hw) == 1
            and total_bytes > _SMALL_TOTAL_BYTES):
        if t_hw >= 256:
            t_hw = ((t_hw // 2 + 127) // 128) * 128     # keep 128-multiple
        elif t_n > 1:
            t_n = (t_n + 1) // 2

    grid = (pl.cdiv(n_pre, t_n), pl.cdiv(n_post, t_hw))

    # Padded wire bytes of one block (for the 3-deep-buffering heuristic).
    c_pack = max(1, 32 // itemsize)                     # 8/f32, 16/bf16, 32/int8
    c_pad = -(-c // c_pack) * c_pack
    lanes_pad = -(-t_hw // 128) * 128
    block_wire_bytes = t_n * c_pad * lanes_pad * itemsize
    want_deep = block_wire_bytes < _SMALL_BLOCK_BYTES and grid[0] * grid[1] >= 4

    cost = pl.CostEstimate(
        flops=3 * x3.size,                 # squares + adds + final scale
        transcendentals=n_pre * n_post,    # one rsqrt per reduced column
        bytes_accessed=2 * x3.size * itemsize,
    )

    out = pl.pallas_call(
        partial(_normalize_kernel, p=p),
        out_shape=jax.ShapeDtypeStruct((n_pre, c, n_post), x.dtype),
        grid_spec=pltpu.PrefetchScalarGridSpec(
            num_scalar_prefetch=0,
            grid=grid,
            in_specs=[_make_in_spec((t_n, c, t_hw), lambda n, h: (n, 0, h),
                                    want_deep)],
            out_specs=pl.BlockSpec((t_n, c, t_hw), lambda n, h: (n, 0, h)),
        ),
        compiler_params=pltpu.CompilerParams(
            dimension_semantics=("parallel", "parallel"),
            vmem_limit_bytes=_VMEM_LIMIT_BYTES,
        ),
        cost_estimate=cost,
    )(x3)

    return out.reshape(shape)


def _ref_normalize(x, p=2, dim=1, eps=EPS):
    xf = x.astype(jnp.float32)
    norm = jnp.power(jnp.sum(jnp.abs(xf) ** p, axis=dim, keepdims=True), 1.0 / p)
    return (xf / jnp.maximum(norm, eps)).astype(x.dtype)


if __name__ == "__main__":
    # Main check: NCHW f32, default p=2, dim=1 (matches the module's forward).
    x = jax.random.normal(jax.random.PRNGKey(0), (2, 4, 16, 16), dtype=jnp.float32)
    y = normalize(x)
    jax.block_until_ready(y)
    assert jnp.allclose(y, _ref_normalize(x), atol=1e-5, rtol=1e-5), "f32 mismatch"

    # Ragged spatial extent, HW <= 128 (full-lane block path).
    x2 = jax.random.normal(jax.random.PRNGKey(1), (2, 4, 10, 10), dtype=jnp.float32)
    y2 = normalize(x2)
    jax.block_until_ready(y2)
    assert jnp.allclose(y2, _ref_normalize(x2), atol=1e-5, rtol=1e-5), "ragged mismatch"

    # Ragged spatial extent > 128 (128-multiple tile + cdiv grid, masked tail block).
    x3_ = jax.random.normal(jax.random.PRNGKey(3), (2, 4, 20, 20), dtype=jnp.float32)
    y3 = normalize(x3_)
    jax.block_until_ready(y3)
    assert jnp.allclose(y3, _ref_normalize(x3_), atol=1e-5, rtol=1e-5), "cdiv mismatch"

    # bf16 I/O path (wire stays bf16; norm + final multiply in f32, one downcast).
    xb = jax.random.normal(jax.random.PRNGKey(2), (2, 4, 16, 16), dtype=jnp.bfloat16)
    yb = normalize(xb)
    jax.block_until_ready(yb)
    assert jnp.allclose(yb.astype(jnp.float32),
                        _ref_normalize(xb).astype(jnp.float32),
                        atol=2e-2, rtol=2e-2), "bf16 mismatch"

    print("KERNEL_OK")
</pallas_src>

<mosaic_0001>
module attributes {stable_mosaic.version = 11 : i64} {
  func.func @_normalize_kernel(%arg0: i32, %arg1: i32, %arg2: memref<2x4x256xf32, #tpu.memory_space<vmem>>, %arg3: memref<2x4x256xf32, #tpu.memory_space<vmem>>) attributes {dimension_semantics = [#tpu.dimension_semantics<parallel>, #tpu.dimension_semantics<parallel>], iteration_bounds = array<i64: 1, 1>, scalar_prefetch = 0 : i64, scratch_operands = 0 : i64, tpu.core_type = #tpu.core_type<tc>, window_params = [{transform_indices = @transform_0, window_bounds = array<i64: 2, 4, 256>}, {transform_indices = @transform_1, window_bounds = array<i64: 2, 4, 256>}]} {
    %c0 = arith.constant 0 : index
    %c0_0 = arith.constant 0 : index
    %c0_1 = arith.constant 0 : index
    %0 = vector.load %arg2[%c0, %c0_0, %c0_1] : memref<2x4x256xf32, #tpu.memory_space<vmem>>, vector<2x4x256xf32>
    %1 = arith.mulf %0, %0 : vector<2x4x256xf32>
    %cst = arith.constant dense<0.000000e+00> : vector<2x256xf32>
    %2 = vector.multi_reduction <add>, %1, %cst [1] : vector<2x4x256xf32> to vector<2x256xf32>
    %3 = vector.shape_cast %2 : vector<2x256xf32> to vector<2x1x256xf32>
    %cst_2 = arith.constant 1.000000e-16 : f32
    %4 = vector.broadcast %cst_2 : f32 to vector<2x1x256xf32>
    %5 = arith.maximumf %3, %4 : vector<2x1x256xf32>
    %6 = math.rsqrt %5 : vector<2x1x256xf32>
    %7 = vector.broadcast %6 : vector<2x1x256xf32> to vector<2x4x256xf32>
    %8 = arith.mulf %0, %7 : vector<2x4x256xf32>
    %c0_3 = arith.constant 0 : index
    %c0_4 = arith.constant 0 : index
    %c0_5 = arith.constant 0 : index
    %9 = vector.load %arg3[%c0_3, %c0_4, %c0_5] : memref<2x4x256xf32, #tpu.memory_space<vmem>>, vector<2x4x256xf32>
    tpu.vector_store %arg3[%c0_3, %c0_4, %c0_5], %8 {strides = array<i32>} : memref<2x4x256xf32, #tpu.memory_space<vmem>>, vector<2x4x256xf32>,
    return
  }
  func.func @transform_0(%arg0: i32, %arg1: i32) -> (i32, i32, i32) {
    %c0_i32 = arith.constant 0 : i32
    %c0_i32_0 = arith.constant 0 : i32
    return %arg0, %c0_i32, %arg1 : i32, i32, i32
  }
  func.func @transform_1(%arg0: i32, %arg1: i32) -> (i32, i32, i32) {
    %c0_i32 = arith.constant 0 : i32
    %c0_i32_0 = arith.constant 0 : i32
    return %arg0, %c0_i32, %arg1 : i32, i32, i32
  }
}

</mosaic_0001>

<bundles_post_ra>
// kernel: tpu_custom_call.1
= control target key start
LH: loop header
LB: loop body
LE: loop exit
PB: predicated region body
PF: predicated region fallthrough
CT: control target
= control target key end

     0   :  { %6 = vsyncpa [#allocation3], 0  ;;  %s254_s0 = inlined_call_operand.hbm [shape: f32[2,4,256], index: 0, kind: input, shape index: {}]   ;;  %s255_s1 = inlined_call_operand.hbm [shape: f32[2,4,256], index: 1, kind: output, shape index: {}]  }
   0x1   :  { %7 = vsyncpa [#allocation4], 0  ;;  %s12_s8 = sshll.u32 %s254_s0, 4  ;;  %s212_s9 = smov [#allocation2]   ;;  %s13_s8 = int_to_ptr.hbm [resolvable:$true] %s12_s8 }
   0x2   :  { %s14_s10 = sshll.u32 %s212_s9, 4  ;;  %s213_s11 = smov 128   ;;  %s15_s10 = int_to_ptr.vmem [resolvable:$true] %s14_s10 }
   0x3   :  { %s214_s12 = smov 8  }
   0x4   :  { %20 = dma.hbm_to_vmem [thread:$0]  %s13_s8, 256, %s15_s10, [#allocation3], %s213_s11, %s213_s11, %s214_s12  }
   0x5   :  { %208 = dma.done.wait [#allocation3], 256  }
   0x6   :  { %209 = vsyncadd [#allocation3], 4294967040  ;;  %v232_v0 = vld [vmem:[#allocation2] sm:$0xff]  ;;  %v234_v1 = vld [vmem:[#allocation2 + $0x8] sm:$0xff]  ;;  %vm42_vm0 = vcmask 1043456   ;;  %s215_s0 = smov [#allocation5]  }
   0x7   :  { %v27_v2 = vmul.f32 %v232_v0, %v232_v0  ;;  %v28_v3 = vmul.f32 %v234_v1, %v234_v1  ;;  %s133_s13 = sshll.u32 %s215_s0, 4  ;;  %s135_s16 = sshll.u32 %s255_s1, 4  ;;  %s134_s13 = int_to_ptr.vmem [resolvable:$true] %s133_s13  ;;  %s136_s16 = int_to_ptr.hbm [resolvable:$true] %s135_s16 }
   0x9   :  { %31 = vst [vmem:[#allocation1] ss:$2 sm:$0xff] %v27_v2 }
   0xa   :  { %35 = vst [vmem:[#allocation1 + $0x10] ss:$2 sm:$0xff] %v28_v3 }
  0x10   :  { %v32_v4 = vld.sshfl [vmem:[#allocation1] sm:$0xff pattern:$0x75316420]  ;;  %v33_v5 = vld.sshfl [vmem:[#allocation1 + $0x8] sm:$0xff pattern:$0x75316420] }
  0x11   :  { %v43_v6 = vsel %vm42_vm0, %v32_v4, 0.0  ;;  %v50_v7 = vsel %vm42_vm0, %v33_v5, 0.0  ;;  %v36_v8 = vld.sshfl [vmem:[#allocation1 + $0x10] sm:$0xff pattern:$0x75316420] }
  0x12   :  { %v44_v9 = vrot.slane %v43_v6, 4  ;;  %v51_v10 = vrot.slane %v50_v7, 4  ;;  %v37_v11 = vld.sshfl [vmem:[#allocation1 + $0x18] sm:$0xff pattern:$0x75316420]  ;;  %v57_v12 = vsel %vm42_vm0, %v36_v8, 0.0 }
  0x13   :  { %v58_v13 = vrot.slane %v57_v12, 4  ;;  %v64_v14 = vsel %vm42_vm0, %v37_v11, 0.0 }
  0x14   :  { %v45_v15 = vadd.f32 %v44_v9, %v43_v6  ;;  %v52_v16 = vadd.f32 %v51_v10, %v50_v7  ;;  %v65_v17 = vrot.slane %v64_v14, 4 }
  0x15   :  { %v59_v18 = vadd.f32 %v58_v13, %v57_v12 }
  0x16   :  { %v46_v19 = vrot.slane %v45_v15, 2  ;;  %v53_v20 = vrot.slane %v52_v16, 2  ;;  %v66_v21 = vadd.f32 %v65_v17, %v64_v14 }
  0x17   :  { %v60_v22 = vrot.slane %v59_v18, 2 }
  0x18   :  { %v47_v23 = vadd.f32 %v46_v19, %v45_v15  ;;  %v54_v24 = vadd.f32 %v53_v20, %v52_v16  ;;  %v67_v25 = vrot.slane %v66_v21, 2 }
  0x19   :  { %v61_v26 = vadd.f32 %v60_v22, %v59_v18 }
  0x1a   :  { %v48_v27 = vrot.slane %v47_v23, 1  ;;  %v55_v28 = vrot.slane %v54_v24, 1  ;;  %v68_v29 = vadd.f32 %v67_v25, %v66_v21 }
  0x1b   :  { %v62_v30 = vrot.slane %v61_v26, 1 }
  0x1c   :  { %v49_v31 = vadd.f32 %v48_v27, %v47_v23  ;;  %v56_v32 = vadd.f32 %v55_v28, %v54_v24  ;;  %v69_v33 = vrot.slane %v68_v29, 1 }
  0x1d   :  { %v63_v34 = vadd.f32 %v62_v30, %v61_v26 }
  0x1e   :  { %v71_v35 = vmax.f32 %v49_v31, 1e-16  ;;  %v72_v36 = vmax.f32 %v56_v32, 1e-16  ;;  %v70_v37 = vadd.f32 %v69_v33, %v68_v29 }
  0x1f   :  { %v73_v38 = vmax.f32 %v63_v34, 1e-16 }
  0x20   :  { %152 = vrsqrt.f32 %v71_v35  ;;  %v74_v39 = vmax.f32 %v70_v37, 1e-16  ;;  %vm91_vm3 = vweird.f32 %v72_v36  ;;  %vm81_vm5 = vweird.f32 %v71_v35 }
  0x21   :  { %154 = vrsqrt.f32 %v72_v36  ;;  %vm101_vm11 = vweird.f32 %v73_v38 }
  0x22   :  { %156 = vrsqrt.f32 %v73_v38  ;;  %vm111_vm7 = vweird.f32 %v74_v39 }
  0x23   :  { %158 = vrsqrt.f32 %v74_v39 }
  0x26   :  { %v153_v40 = vpop.eup %152 }
  0x27   :  { %v155_v41 = vpop.eup %154  ;;  %v76_v42 = vmul.f32 %v153_v40, %v71_v35  ;;  %vm82_vm2 = vweird.f32 %v153_v40 }
  0x28   :  { %v157_v43 = vpop.eup %156  ;;  %v86_v44 = vmul.f32 %v155_v41, %v72_v36  ;;  %vm92_vm1 = vweird.f32 %v155_v41  ;;  %vm83_vm8 = vmor %vm81_vm5, %vm82_vm2 }
  0x29   :  { %v159_v45 = vpop.eup %158  ;;  %v77_v46 = vmul.f32 %v153_v40, %v76_v42  ;;  %v96_v47 = vmul.f32 %v157_v43, %v73_v38  ;;  %vm93_vm6 = vmor %vm91_vm3, %vm92_vm1  ;;  %vm102_vm9 = vweird.f32 %v157_v43 }
  0x2a   :  { %v87_v48 = vmul.f32 %v155_v41, %v86_v44  ;;  %v106_v49 = vmul.f32 %v159_v45, %v74_v39  ;;  %vm112_vm4 = vweird.f32 %v159_v45  ;;  %vm103_vm12 = vmor %vm101_vm11, %vm102_vm9 }
  0x2b   :  { %v78_v50 = vmul.f32 0.5, %v77_v46  ;;  %v97_v51 = vmul.f32 %v157_v43, %v96_v47  ;;  %vm113_vm10 = vmor %vm111_vm7, %vm112_vm4 }
  0x2c   :  { %v88_v52 = vmul.f32 0.5, %v87_v48  ;;  %v107_v53 = vmul.f32 %v159_v45, %v106_v49 }
  0x2d   :  { %v79_v54 = vsub.f32 1.5, %v78_v50  ;;  %v98_v55 = vmul.f32 0.5, %v97_v51 }
  0x2e   :  { %v89_v56 = vsub.f32 1.5, %v88_v52  ;;  %v108_v57 = vmul.f32 0.5, %v107_v53 }
  0x2f   :  { %v99_v58 = vsub.f32 1.5, %v98_v55  ;;  %v80_v59 = vmul.f32 %v153_v40, %v79_v54 }
  0x30   :  { %v90_v60 = vmul.f32 %v155_v41, %v89_v56  ;;  %v109_v61 = vsub.f32 1.5, %v108_v57 }
  0x31   :  { %v100_v63 = vmul.f32 %v157_v43, %v99_v58  ;;  %v84_v4 = vsel %vm83_vm8, %v153_v40, %v80_v59 }
  0x32   :  { %v94_v62 = vsel %vm93_vm6, %v155_v41, %v90_v60  ;;  %v110_v2 = vmul.f32 %v159_v45, %v109_v61 }
  0x33   :  { %v119_v3 = vrot.slane %v94_v62, 4  ;;  %v104_v9 = vsel %vm103_vm12, %v157_v43, %v100_v63 }
  0x34   :  { %v114_v5 = vsel %vm113_vm10, %v159_v45, %v110_v2 }
  0x35   :  { %v121_v6 = vsel %vm42_vm0, %v84_v4, %v119_v3  ;;  %v120_v7 = vrot.slane %v114_v5, 4 }
  0x36   :  { %v125_v8 = vmul.f32 %v121_v6, %v232_v0 }
  0x37   :  { %v122_v10 = vsel %vm42_vm0, %v104_v9, %v120_v7 }
  0x38   :  { %127 = vst [vmem:[#allocation5] sm:$0xff] %v125_v8  ;;  %v126_v11 = vmul.f32 %v122_v10, %v234_v1 }
  0x3a   :  { %128 = vst [vmem:[#allocation5 + $0x8] sm:$0xff] %v126_v11 }
  0x3b   :  { %141 = dma.vmem_to_hbm [thread:$0]  %s134_s13, 256, %s136_s16, [#allocation4], %s213_s11, %s213_s11, %s214_s12  }
  0x3c   :  { %210 = dma.done.wait [#allocation4], 256  }
  0x3d   :  { %211 = vsyncadd [#allocation4], 4294967040 }
  0x3e   :  { %146 = vsyncpa [#allocation3], 1 }
  0x3f   :  { %147 = vsyncpa [#allocation4], 1 }

</bundles_post_ra>
